<compile_context>
chip_gen: v6e
topology: v6e:2x2x1
jax: 0.10.0
libtpu: 0.0.40
codegen_flags: <defaults>
</compile_context>

<pallas_src>
import jax
import jax.numpy as jnp
from jax import lax
from jax.experimental import pallas as pl
from jax.experimental.pallas import tpu as pltpu


def _round_up(n, m):
    return ((n + m - 1) // m) * m


def _cdiv(a, b):
    return (a + b - 1) // b


_CS = 8  # sublane chunk: one full (8, 128) f32 vreg per feature row

# Packed parameter layout (f32, length 80):
#   [0:30)  w1 (10, 3) row-major
#   [30:40) b1 (10,)
#   [40:70) w2 (3, 10) row-major
#   [70:73) b2 (3,)
#   [73:80) padding


def sicbo_kernel(params_ref, x_ref, o_ref):
    # params_ref: SMEM (80,) f32 — scalar weights/biases
    # x_ref:      VMEM (3, S, 128) f32  (feature, sublane-row, lane)
    # o_ref:      VMEM (3, S, 128) f32
    w1 = [[params_ref[j * 3 + k] for k in range(3)] for j in range(10)]
    b1 = [params_ref[30 + j] for j in range(10)]
    w2 = [[params_ref[40 + f * 10 + j] for j in range(10)] for f in range(3)]
    b2 = [params_ref[70 + f] for f in range(3)]

    s_rows = x_ref.shape[1]
    n_chunks = s_rows // _CS

    def compute_chunk(r):
        # Load one (8, 128) vreg per input feature.
        x0 = x_ref[0, pl.ds(r, _CS), :]
        x1 = x_ref[1, pl.ds(r, _CS), :]
        x2 = x_ref[2, pl.ds(r, _CS), :]
        # Layer 1 + ReLU: scalar-splat FMAs on the VPU; bias added once,
        # never materialized as a full-width broadcast.
        h = [
            jnp.maximum(w1[j][0] * x0 + w1[j][1] * x1 + w1[j][2] * x2 + b1[j], 0.0)
            for j in range(10)
        ]
        # Layer 2: y_f = sum_j w2[f, j] * h_j + b2[f]
        for f in range(3):
            y = w2[f][0] * h[0]
            for j in range(1, 10):
                y = y + w2[f][j] * h[j]
            o_ref[f, pl.ds(r, _CS), :] = y + b2[f]

    if n_chunks == 1:
        compute_chunk(0)
    else:
        def body(c, carry):
            compute_chunk(pl.multiple_of(c * _CS, _CS))
            return carry

        lax.fori_loop(0, n_chunks, body, 0, unroll=min(4, n_chunks))


def _pack_params(w1, b1, w2, b2):
    flat = jnp.concatenate([
        jnp.asarray(w1, jnp.float32).reshape(-1),
        jnp.asarray(b1, jnp.float32).reshape(-1),
        jnp.asarray(w2, jnp.float32).reshape(-1),
        jnp.asarray(b2, jnp.float32).reshape(-1),
    ])
    return jnp.zeros((80,), jnp.float32).at[: flat.shape[0]].set(flat)


def _choose_tiling(rows, tb_max):
    """Pick per-step sublane-row count S (multiple of 8) and padded rows."""
    s_cap = max(8, (tb_max // 128) // 8 * 8)
    n_steps = max(1, _cdiv(rows, s_cap))
    if rows > 8 and n_steps < 2:
        n_steps = 2  # >=2 grid steps lets v7x shard the batch over both TCs
    s = _round_up(_cdiv(rows, n_steps), 8)
    rows_p = _round_up(rows, s)
    return s, rows_p


def sicbo_pallas_packed(x_packed, params_flat, *, tb_max=131072):
    """Transpose-free path.

    x_packed: (3, R, 128) f32 with batch element b at (row=b//128, lane=b%128).
    Returns y_packed with the same layout.
    """
    assert x_packed.ndim == 3 and x_packed.shape[0] == 3 and x_packed.shape[2] == 128
    rows = x_packed.shape[1]
    s, rows_p = _choose_tiling(rows, tb_max)
    xt = x_packed
    if rows_p != rows:
        xt = jnp.zeros((3, rows_p, 128), jnp.float32).at[:, :rows, :].set(xt)
    grid = rows_p // s

    n = rows_p * 128
    cost = pl.CostEstimate(
        flops=2 * n * (3 * 10 + 10 * 3),
        transcendentals=0,
        bytes_accessed=(2 * 3 * n + 80) * 4,
    )

    out = pl.pallas_call(
        sicbo_kernel,
        out_shape=jax.ShapeDtypeStruct((3, rows_p, 128), jnp.float32),
        grid=(grid,),
        in_specs=[
            pl.BlockSpec(memory_space=pltpu.MemorySpace.SMEM),  # packed weights
            pl.BlockSpec((3, s, 128), lambda i: (0, i, 0)),      # batch tile
        ],
        out_specs=pl.BlockSpec((3, s, 128), lambda i: (0, i, 0)),
        compiler_params=pltpu.CompilerParams(
            dimension_semantics=("parallel",)),
        cost_estimate=cost,
    )(params_flat, xt)

    if rows_p != rows:
        out = out[:, :rows, :]
    return out


def sicbo_forward_pallas(x, w1, b1, w2, b2, *, tb_max=131072):
    """Torch-compatible (B, 3) -> (B, 3) wrapper.

    Pays one pad+transpose on each side purely for layout compatibility;
    feed sicbo_pallas_packed() directly to avoid those extra HBM passes.
    """
    B = x.shape[0]
    rows = _round_up(max(1, _cdiv(B, 128)), 8)
    n = rows * 128
    xp = jnp.zeros((n, 3), jnp.float32).at[:B, :].set(x.astype(jnp.float32))
    x_packed = xp.T.reshape(3, rows, 128)  # one transpose pass (compat only)
    y_packed = sicbo_pallas_packed(
        x_packed, _pack_params(w1, b1, w2, b2), tb_max=tb_max)
    return y_packed.reshape(3, n)[:, :B].T  # one transpose pass (compat only)


def reference_forward(x, w1, b1, w2, b2):
    """Pure-JAX reference with torch-layout weights."""
    h = jnp.maximum(x.astype(jnp.float32) @ w1.T + b1, 0.0)
    return h @ w2.T + b2


def init_params(key):
    # Mimic torch.nn.Linear default init: U(-1/sqrt(fan_in), 1/sqrt(fan_in)).
    k1, k2, k3, k4 = jax.random.split(key, 4)
    bound1 = 1.0 / jnp.sqrt(3.0)
    bound2 = 1.0 / jnp.sqrt(10.0)
    w1 = jax.random.uniform(k1, (10, 3), jnp.float32, -bound1, bound1)
    b1 = jax.random.uniform(k2, (10,), jnp.float32, -bound1, bound1)
    w2 = jax.random.uniform(k3, (3, 10), jnp.float32, -bound2, bound2)
    b2 = jax.random.uniform(k4, (3,), jnp.float32, -bound2, bound2)
    return w1, b1, w2, b2


if __name__ == "__main__":
    key = jax.random.PRNGKey(0)
    pkey, xkey1, xkey2 = jax.random.split(key, 3)
    params = init_params(pkey)

    # Case 1: the module's natural shape — a couple of dice triples in [1, 6].
    # Exercises the single-step / single-chunk kernel path.
    x_small = jax.random.randint(xkey1, (2, 3), 1, 7).astype(jnp.float32)
    out_small = jax.block_until_ready(sicbo_forward_pallas(x_small, *params))
    ref_small = reference_forward(x_small, *params)
    assert out_small.shape == (2, 3)
    assert jnp.allclose(out_small, ref_small, atol=1e-5, rtol=1e-5)

    # Case 2: larger, non-aligned batch — exercises the multi-step "parallel"
    # grid (2 steps), the row-padding path, and the unrolled inner chunk loop.
    x_big = jax.random.uniform(xkey2, (2500, 3), jnp.float32, 1.0, 7.0)
    out_big = jax.block_until_ready(sicbo_forward_pallas(x_big, *params))
    ref_big = reference_forward(x_big, *params)
    assert out_big.shape == (2500, 3)
    assert jnp.allclose(out_big, ref_big, atol=1e-5, rtol=1e-5)

    print("KERNEL_OK")
</pallas_src>

<mosaic_0001>
module attributes {stable_mosaic.version = 11 : i64} {
  func.func @sicbo_kernel(%arg0: i32, %arg1: memref<80xf32, #tpu.memory_space<smem>>, %arg2: memref<3x8x128xf32, #tpu.memory_space<vmem>>, %arg3: memref<3x8x128xf32, #tpu.memory_space<vmem>>) attributes {dimension_semantics = [#tpu.dimension_semantics<parallel>], iteration_bounds = array<i64: 1>, scalar_prefetch = 0 : i64, scratch_operands = 0 : i64, tpu.core_type = #tpu.core_type<tc>, window_params = [{transform_indices = @transform_0, window_bounds = array<i64: 80>}, {transform_indices = @transform_1, window_bounds = array<i64: 3, 8, 128>}, {transform_indices = @transform_2, window_bounds = array<i64: 3, 8, 128>}]} {
    %c0 = arith.constant 0 : index
    %0 = memref.load %arg1[%c0] : memref<80xf32, #tpu.memory_space<smem>>
    %c1 = arith.constant 1 : index
    %1 = memref.load %arg1[%c1] : memref<80xf32, #tpu.memory_space<smem>>
    %c2 = arith.constant 2 : index
    %2 = memref.load %arg1[%c2] : memref<80xf32, #tpu.memory_space<smem>>
    %c3 = arith.constant 3 : index
    %3 = memref.load %arg1[%c3] : memref<80xf32, #tpu.memory_space<smem>>
    %c4 = arith.constant 4 : index
    %4 = memref.load %arg1[%c4] : memref<80xf32, #tpu.memory_space<smem>>
    %c5 = arith.constant 5 : index
    %5 = memref.load %arg1[%c5] : memref<80xf32, #tpu.memory_space<smem>>
    %c6 = arith.constant 6 : index
    %6 = memref.load %arg1[%c6] : memref<80xf32, #tpu.memory_space<smem>>
    %c7 = arith.constant 7 : index
    %7 = memref.load %arg1[%c7] : memref<80xf32, #tpu.memory_space<smem>>
    %c8 = arith.constant 8 : index
    %8 = memref.load %arg1[%c8] : memref<80xf32, #tpu.memory_space<smem>>
    %c9 = arith.constant 9 : index
    %9 = memref.load %arg1[%c9] : memref<80xf32, #tpu.memory_space<smem>>
    %c10 = arith.constant 10 : index
    %10 = memref.load %arg1[%c10] : memref<80xf32, #tpu.memory_space<smem>>
    %c11 = arith.constant 11 : index
    %11 = memref.load %arg1[%c11] : memref<80xf32, #tpu.memory_space<smem>>
    %c12 = arith.constant 12 : index
    %12 = memref.load %arg1[%c12] : memref<80xf32, #tpu.memory_space<smem>>
    %c13 = arith.constant 13 : index
    %13 = memref.load %arg1[%c13] : memref<80xf32, #tpu.memory_space<smem>>
    %c14 = arith.constant 14 : index
    %14 = memref.load %arg1[%c14] : memref<80xf32, #tpu.memory_space<smem>>
    %c15 = arith.constant 15 : index
    %15 = memref.load %arg1[%c15] : memref<80xf32, #tpu.memory_space<smem>>
    %c16 = arith.constant 16 : index
    %16 = memref.load %arg1[%c16] : memref<80xf32, #tpu.memory_space<smem>>
    %c17 = arith.constant 17 : index
    %17 = memref.load %arg1[%c17] : memref<80xf32, #tpu.memory_space<smem>>
    %c18 = arith.constant 18 : index
    %18 = memref.load %arg1[%c18] : memref<80xf32, #tpu.memory_space<smem>>
    %c19 = arith.constant 19 : index
    %19 = memref.load %arg1[%c19] : memref<80xf32, #tpu.memory_space<smem>>
    %c20 = arith.constant 20 : index
    %20 = memref.load %arg1[%c20] : memref<80xf32, #tpu.memory_space<smem>>
    %c21 = arith.constant 21 : index
    %21 = memref.load %arg1[%c21] : memref<80xf32, #tpu.memory_space<smem>>
    %c22 = arith.constant 22 : index
    %22 = memref.load %arg1[%c22] : memref<80xf32, #tpu.memory_space<smem>>
    %c23 = arith.constant 23 : index
    %23 = memref.load %arg1[%c23] : memref<80xf32, #tpu.memory_space<smem>>
    %c24 = arith.constant 24 : index
    %24 = memref.load %arg1[%c24] : memref<80xf32, #tpu.memory_space<smem>>
    %c25 = arith.constant 25 : index
    %25 = memref.load %arg1[%c25] : memref<80xf32, #tpu.memory_space<smem>>
    %c26 = arith.constant 26 : index
    %26 = memref.load %arg1[%c26] : memref<80xf32, #tpu.memory_space<smem>>
    %c27 = arith.constant 27 : index
    %27 = memref.load %arg1[%c27] : memref<80xf32, #tpu.memory_space<smem>>
    %c28 = arith.constant 28 : index
    %28 = memref.load %arg1[%c28] : memref<80xf32, #tpu.memory_space<smem>>
    %c29 = arith.constant 29 : index
    %29 = memref.load %arg1[%c29] : memref<80xf32, #tpu.memory_space<smem>>
    %c30 = arith.constant 30 : index
    %30 = memref.load %arg1[%c30] : memref<80xf32, #tpu.memory_space<smem>>
    %c31 = arith.constant 31 : index
    %31 = memref.load %arg1[%c31] : memref<80xf32, #tpu.memory_space<smem>>
    %c32 = arith.constant 32 : index
    %32 = memref.load %arg1[%c32] : memref<80xf32, #tpu.memory_space<smem>>
    %c33 = arith.constant 33 : index
    %33 = memref.load %arg1[%c33] : memref<80xf32, #tpu.memory_space<smem>>
    %c34 = arith.constant 34 : index
    %34 = memref.load %arg1[%c34] : memref<80xf32, #tpu.memory_space<smem>>
    %c35 = arith.constant 35 : index
    %35 = memref.load %arg1[%c35] : memref<80xf32, #tpu.memory_space<smem>>
    %c36 = arith.constant 36 : index
    %36 = memref.load %arg1[%c36] : memref<80xf32, #tpu.memory_space<smem>>
    %c37 = arith.constant 37 : index
    %37 = memref.load %arg1[%c37] : memref<80xf32, #tpu.memory_space<smem>>
    %c38 = arith.constant 38 : index
    %38 = memref.load %arg1[%c38] : memref<80xf32, #tpu.memory_space<smem>>
    %c39 = arith.constant 39 : index
    %39 = memref.load %arg1[%c39] : memref<80xf32, #tpu.memory_space<smem>>
    %c40 = arith.constant 40 : index
    %40 = memref.load %arg1[%c40] : memref<80xf32, #tpu.memory_space<smem>>
    %c41 = arith.constant 41 : index
    %41 = memref.load %arg1[%c41] : memref<80xf32, #tpu.memory_space<smem>>
    %c42 = arith.constant 42 : index
    %42 = memref.load %arg1[%c42] : memref<80xf32, #tpu.memory_space<smem>>
    %c43 = arith.constant 43 : index
    %43 = memref.load %arg1[%c43] : memref<80xf32, #tpu.memory_space<smem>>
    %c44 = arith.constant 44 : index
    %44 = memref.load %arg1[%c44] : memref<80xf32, #tpu.memory_space<smem>>
    %c45 = arith.constant 45 : index
    %45 = memref.load %arg1[%c45] : memref<80xf32, #tpu.memory_space<smem>>
    %c46 = arith.constant 46 : index
    %46 = memref.load %arg1[%c46] : memref<80xf32, #tpu.memory_space<smem>>
    %c47 = arith.constant 47 : index
    %47 = memref.load %arg1[%c47] : memref<80xf32, #tpu.memory_space<smem>>
    %c48 = arith.constant 48 : index
    %48 = memref.load %arg1[%c48] : memref<80xf32, #tpu.memory_space<smem>>
    %c49 = arith.constant 49 : index
    %49 = memref.load %arg1[%c49] : memref<80xf32, #tpu.memory_space<smem>>
    %c50 = arith.constant 50 : index
    %50 = memref.load %arg1[%c50] : memref<80xf32, #tpu.memory_space<smem>>
    %c51 = arith.constant 51 : index
    %51 = memref.load %arg1[%c51] : memref<80xf32, #tpu.memory_space<smem>>
    %c52 = arith.constant 52 : index
    %52 = memref.load %arg1[%c52] : memref<80xf32, #tpu.memory_space<smem>>
    %c53 = arith.constant 53 : index
    %53 = memref.load %arg1[%c53] : memref<80xf32, #tpu.memory_space<smem>>
    %c54 = arith.constant 54 : index
    %54 = memref.load %arg1[%c54] : memref<80xf32, #tpu.memory_space<smem>>
    %c55 = arith.constant 55 : index
    %55 = memref.load %arg1[%c55] : memref<80xf32, #tpu.memory_space<smem>>
    %c56 = arith.constant 56 : index
    %56 = memref.load %arg1[%c56] : memref<80xf32, #tpu.memory_space<smem>>
    %c57 = arith.constant 57 : index
    %57 = memref.load %arg1[%c57] : memref<80xf32, #tpu.memory_space<smem>>
    %c58 = arith.constant 58 : index
    %58 = memref.load %arg1[%c58] : memref<80xf32, #tpu.memory_space<smem>>
    %c59 = arith.constant 59 : index
    %59 = memref.load %arg1[%c59] : memref<80xf32, #tpu.memory_space<smem>>
    %c60 = arith.constant 60 : index
    %60 = memref.load %arg1[%c60] : memref<80xf32, #tpu.memory_space<smem>>
    %c61 = arith.constant 61 : index
    %61 = memref.load %arg1[%c61] : memref<80xf32, #tpu.memory_space<smem>>
    %c62 = arith.constant 62 : index
    %62 = memref.load %arg1[%c62] : memref<80xf32, #tpu.memory_space<smem>>
    %c63 = arith.constant 63 : index
    %63 = memref.load %arg1[%c63] : memref<80xf32, #tpu.memory_space<smem>>
    %c64 = arith.constant 64 : index
    %64 = memref.load %arg1[%c64] : memref<80xf32, #tpu.memory_space<smem>>
    %c65 = arith.constant 65 : index
    %65 = memref.load %arg1[%c65] : memref<80xf32, #tpu.memory_space<smem>>
    %c66 = arith.constant 66 : index
    %66 = memref.load %arg1[%c66] : memref<80xf32, #tpu.memory_space<smem>>
    %c67 = arith.constant 67 : index
    %67 = memref.load %arg1[%c67] : memref<80xf32, #tpu.memory_space<smem>>
    %c68 = arith.constant 68 : index
    %68 = memref.load %arg1[%c68] : memref<80xf32, #tpu.memory_space<smem>>
    %c69 = arith.constant 69 : index
    %69 = memref.load %arg1[%c69] : memref<80xf32, #tpu.memory_space<smem>>
    %c70 = arith.constant 70 : index
    %70 = memref.load %arg1[%c70] : memref<80xf32, #tpu.memory_space<smem>>
    %c71 = arith.constant 71 : index
    %71 = memref.load %arg1[%c71] : memref<80xf32, #tpu.memory_space<smem>>
    %c72 = arith.constant 72 : index
    %72 = memref.load %arg1[%c72] : memref<80xf32, #tpu.memory_space<smem>>
    %c0_0 = arith.constant 0 : index
    %c0_1 = arith.constant 0 : index
    %c0_2 = arith.constant 0 : index
    %73 = vector.load %arg2[%c0_0, %c0_1, %c0_2] : memref<3x8x128xf32, #tpu.memory_space<vmem>>, vector<1x8x128xf32>
    %74 = vector.shape_cast %73 : vector<1x8x128xf32> to vector<8x128xf32>
    %c1_3 = arith.constant 1 : index
    %c0_4 = arith.constant 0 : index
    %c0_5 = arith.constant 0 : index
    %75 = vector.load %arg2[%c1_3, %c0_4, %c0_5] : memref<3x8x128xf32, #tpu.memory_space<vmem>>, vector<1x8x128xf32>
    %76 = vector.shape_cast %75 : vector<1x8x128xf32> to vector<8x128xf32>
    %c2_6 = arith.constant 2 : index
    %c0_7 = arith.constant 0 : index
    %c0_8 = arith.constant 0 : index
    %77 = vector.load %arg2[%c2_6, %c0_7, %c0_8] : memref<3x8x128xf32, #tpu.memory_space<vmem>>, vector<1x8x128xf32>
    %78 = vector.shape_cast %77 : vector<1x8x128xf32> to vector<8x128xf32>
    %79 = vector.broadcast %0 : f32 to vector<8x128xf32>
    %80 = arith.mulf %79, %74 : vector<8x128xf32>
    %81 = vector.broadcast %1 : f32 to vector<8x128xf32>
    %82 = arith.mulf %81, %76 : vector<8x128xf32>
    %83 = arith.addf %80, %82 : vector<8x128xf32>
    %84 = vector.broadcast %2 : f32 to vector<8x128xf32>
    %85 = arith.mulf %84, %78 : vector<8x128xf32>
    %86 = arith.addf %83, %85 : vector<8x128xf32>
    %87 = vector.broadcast %30 : f32 to vector<8x128xf32>
    %88 = arith.addf %86, %87 : vector<8x128xf32>
    %cst = arith.constant 0.000000e+00 : f32
    %89 = vector.broadcast %cst : f32 to vector<8x128xf32>
    %90 = arith.maximumf %88, %89 : vector<8x128xf32>
    %91 = vector.broadcast %3 : f32 to vector<8x128xf32>
    %92 = arith.mulf %91, %74 : vector<8x128xf32>
    %93 = vector.broadcast %4 : f32 to vector<8x128xf32>
    %94 = arith.mulf %93, %76 : vector<8x128xf32>
    %95 = arith.addf %92, %94 : vector<8x128xf32>
    %96 = vector.broadcast %5 : f32 to vector<8x128xf32>
    %97 = arith.mulf %96, %78 : vector<8x128xf32>
    %98 = arith.addf %95, %97 : vector<8x128xf32>
    %99 = vector.broadcast %31 : f32 to vector<8x128xf32>
    %100 = arith.addf %98, %99 : vector<8x128xf32>
    %cst_9 = arith.constant 0.000000e+00 : f32
    %101 = vector.broadcast %cst_9 : f32 to vector<8x128xf32>
    %102 = arith.maximumf %100, %101 : vector<8x128xf32>
    %103 = vector.broadcast %6 : f32 to vector<8x128xf32>
    %104 = arith.mulf %103, %74 : vector<8x128xf32>
    %105 = vector.broadcast %7 : f32 to vector<8x128xf32>
    %106 = arith.mulf %105, %76 : vector<8x128xf32>
    %107 = arith.addf %104, %106 : vector<8x128xf32>
    %108 = vector.broadcast %8 : f32 to vector<8x128xf32>
    %109 = arith.mulf %108, %78 : vector<8x128xf32>
    %110 = arith.addf %107, %109 : vector<8x128xf32>
    %111 = vector.broadcast %32 : f32 to vector<8x128xf32>
    %112 = arith.addf %110, %111 : vector<8x128xf32>
    %cst_10 = arith.constant 0.000000e+00 : f32
    %113 = vector.broadcast %cst_10 : f32 to vector<8x128xf32>
    %114 = arith.maximumf %112, %113 : vector<8x128xf32>
    %115 = vector.broadcast %9 : f32 to vector<8x128xf32>
    %116 = arith.mulf %115, %74 : vector<8x128xf32>
    %117 = vector.broadcast %10 : f32 to vector<8x128xf32>
    %118 = arith.mulf %117, %76 : vector<8x128xf32>
    %119 = arith.addf %116, %118 : vector<8x128xf32>
    %120 = vector.broadcast %11 : f32 to vector<8x128xf32>
    %121 = arith.mulf %120, %78 : vector<8x128xf32>
    %122 = arith.addf %119, %121 : vector<8x128xf32>
    %123 = vector.broadcast %33 : f32 to vector<8x128xf32>
    %124 = arith.addf %122, %123 : vector<8x128xf32>
    %cst_11 = arith.constant 0.000000e+00 : f32
    %125 = vector.broadcast %cst_11 : f32 to vector<8x128xf32>
    %126 = arith.maximumf %124, %125 : vector<8x128xf32>
    %127 = vector.broadcast %12 : f32 to vector<8x128xf32>
    %128 = arith.mulf %127, %74 : vector<8x128xf32>
    %129 = vector.broadcast %13 : f32 to vector<8x128xf32>
    %130 = arith.mulf %129, %76 : vector<8x128xf32>
    %131 = arith.addf %128, %130 : vector<8x128xf32>
    %132 = vector.broadcast %14 : f32 to vector<8x128xf32>
    %133 = arith.mulf %132, %78 : vector<8x128xf32>
    %134 = arith.addf %131, %133 : vector<8x128xf32>
    %135 = vector.broadcast %34 : f32 to vector<8x128xf32>
    %136 = arith.addf %134, %135 : vector<8x128xf32>
    %cst_12 = arith.constant 0.000000e+00 : f32
    %137 = vector.broadcast %cst_12 : f32 to vector<8x128xf32>
    %138 = arith.maximumf %136, %137 : vector<8x128xf32>
    %139 = vector.broadcast %15 : f32 to vector<8x128xf32>
    %140 = arith.mulf %139, %74 : vector<8x128xf32>
    %141 = vector.broadcast %16 : f32 to vector<8x128xf32>
    %142 = arith.mulf %141, %76 : vector<8x128xf32>
    %143 = arith.addf %140, %142 : vector<8x128xf32>
    %144 = vector.broadcast %17 : f32 to vector<8x128xf32>
    %145 = arith.mulf %144, %78 : vector<8x128xf32>
    %146 = arith.addf %143, %145 : vector<8x128xf32>
    %147 = vector.broadcast %35 : f32 to vector<8x128xf32>
    %148 = arith.addf %146, %147 : vector<8x128xf32>
    %cst_13 = arith.constant 0.000000e+00 : f32
    %149 = vector.broadcast %cst_13 : f32 to vector<8x128xf32>
    %150 = arith.maximumf %148, %149 : vector<8x128xf32>
    %151 = vector.broadcast %18 : f32 to vector<8x128xf32>
    %152 = arith.mulf %151, %74 : vector<8x128xf32>
    %153 = vector.broadcast %19 : f32 to vector<8x128xf32>
    %154 = arith.mulf %153, %76 : vector<8x128xf32>
    %155 = arith.addf %152, %154 : vector<8x128xf32>
    %156 = vector.broadcast %20 : f32 to vector<8x128xf32>
    %157 = arith.mulf %156, %78 : vector<8x128xf32>
    %158 = arith.addf %155, %157 : vector<8x128xf32>
    %159 = vector.broadcast %36 : f32 to vector<8x128xf32>
    %160 = arith.addf %158, %159 : vector<8x128xf32>
    %cst_14 = arith.constant 0.000000e+00 : f32
    %161 = vector.broadcast %cst_14 : f32 to vector<8x128xf32>
    %162 = arith.maximumf %160, %161 : vector<8x128xf32>
    %163 = vector.broadcast %21 : f32 to vector<8x128xf32>
    %164 = arith.mulf %163, %74 : vector<8x128xf32>
    %165 = vector.broadcast %22 : f32 to vector<8x128xf32>
    %166 = arith.mulf %165, %76 : vector<8x128xf32>
    %167 = arith.addf %164, %166 : vector<8x128xf32>
    %168 = vector.broadcast %23 : f32 to vector<8x128xf32>
    %169 = arith.mulf %168, %78 : vector<8x128xf32>
    %170 = arith.addf %167, %169 : vector<8x128xf32>
    %171 = vector.broadcast %37 : f32 to vector<8x128xf32>
    %172 = arith.addf %170, %171 : vector<8x128xf32>
    %cst_15 = arith.constant 0.000000e+00 : f32
    %173 = vector.broadcast %cst_15 : f32 to vector<8x128xf32>
    %174 = arith.maximumf %172, %173 : vector<8x128xf32>
    %175 = vector.broadcast %24 : f32 to vector<8x128xf32>
    %176 = arith.mulf %175, %74 : vector<8x128xf32>
    %177 = vector.broadcast %25 : f32 to vector<8x128xf32>
    %178 = arith.mulf %177, %76 : vector<8x128xf32>
    %179 = arith.addf %176, %178 : vector<8x128xf32>
    %180 = vector.broadcast %26 : f32 to vector<8x128xf32>
    %181 = arith.mulf %180, %78 : vector<8x128xf32>
    %182 = arith.addf %179, %181 : vector<8x128xf32>
    %183 = vector.broadcast %38 : f32 to vector<8x128xf32>
    %184 = arith.addf %182, %183 : vector<8x128xf32>
    %cst_16 = arith.constant 0.000000e+00 : f32
    %185 = vector.broadcast %cst_16 : f32 to vector<8x128xf32>
    %186 = arith.maximumf %184, %185 : vector<8x128xf32>
    %187 = vector.broadcast %27 : f32 to vector<8x128xf32>
    %188 = arith.mulf %187, %74 : vector<8x128xf32>
    %189 = vector.broadcast %28 : f32 to vector<8x128xf32>
    %190 = arith.mulf %189, %76 : vector<8x128xf32>
    %191 = arith.addf %188, %190 : vector<8x128xf32>
    %192 = vector.broadcast %29 : f32 to vector<8x128xf32>
    %193 = arith.mulf %192, %78 : vector<8x128xf32>
    %194 = arith.addf %191, %193 : vector<8x128xf32>
    %195 = vector.broadcast %39 : f32 to vector<8x128xf32>
    %196 = arith.addf %194, %195 : vector<8x128xf32>
    %cst_17 = arith.constant 0.000000e+00 : f32
    %197 = vector.broadcast %cst_17 : f32 to vector<8x128xf32>
    %198 = arith.maximumf %196, %197 : vector<8x128xf32>
    %199 = vector.broadcast %40 : f32 to vector<8x128xf32>
    %200 = arith.mulf %199, %90 : vector<8x128xf32>
    %201 = vector.broadcast %41 : f32 to vector<8x128xf32>
    %202 = arith.mulf %201, %102 : vector<8x128xf32>
    %203 = arith.addf %200, %202 : vector<8x128xf32>
    %204 = vector.broadcast %42 : f32 to vector<8x128xf32>
    %205 = arith.mulf %204, %114 : vector<8x128xf32>
    %206 = arith.addf %203, %205 : vector<8x128xf32>
    %207 = vector.broadcast %43 : f32 to vector<8x128xf32>
    %208 = arith.mulf %207, %126 : vector<8x128xf32>
    %209 = arith.addf %206, %208 : vector<8x128xf32>
    %210 = vector.broadcast %44 : f32 to vector<8x128xf32>
    %211 = arith.mulf %210, %138 : vector<8x128xf32>
    %212 = arith.addf %209, %211 : vector<8x128xf32>
    %213 = vector.broadcast %45 : f32 to vector<8x128xf32>
    %214 = arith.mulf %213, %150 : vector<8x128xf32>
    %215 = arith.addf %212, %214 : vector<8x128xf32>
    %216 = vector.broadcast %46 : f32 to vector<8x128xf32>
    %217 = arith.mulf %216, %162 : vector<8x128xf32>
    %218 = arith.addf %215, %217 : vector<8x128xf32>
    %219 = vector.broadcast %47 : f32 to vector<8x128xf32>
    %220 = arith.mulf %219, %174 : vector<8x128xf32>
    %221 = arith.addf %218, %220 : vector<8x128xf32>
    %222 = vector.broadcast %48 : f32 to vector<8x128xf32>
    %223 = arith.mulf %222, %186 : vector<8x128xf32>
    %224 = arith.addf %221, %223 : vector<8x128xf32>
    %225 = vector.broadcast %49 : f32 to vector<8x128xf32>
    %226 = arith.mulf %225, %198 : vector<8x128xf32>
    %227 = arith.addf %224, %226 : vector<8x128xf32>
    %228 = vector.broadcast %70 : f32 to vector<8x128xf32>
    %229 = arith.addf %227, %228 : vector<8x128xf32>
    %c0_18 = arith.constant 0 : index
    %c0_19 = arith.constant 0 : index
    %c0_20 = arith.constant 0 : index
    %230 = vector.load %arg3[%c0_18, %c0_19, %c0_20] : memref<3x8x128xf32, #tpu.memory_space<vmem>>, vector<1x8x128xf32>
    %231 = vector.shape_cast %230 : vector<1x8x128xf32> to vector<8x128xf32>
    %232 = vector.shape_cast %229 : vector<8x128xf32> to vector<1x8x128xf32>
    tpu.vector_store %arg3[%c0_18, %c0_19, %c0_20], %232 {strides = array<i32>} : memref<3x8x128xf32, #tpu.memory_space<vmem>>, vector<1x8x128xf32>,
    %233 = vector.broadcast %50 : f32 to vector<8x128xf32>
    %234 = arith.mulf %233, %90 : vector<8x128xf32>
    %235 = vector.broadcast %51 : f32 to vector<8x128xf32>
    %236 = arith.mulf %235, %102 : vector<8x128xf32>
    %237 = arith.addf %234, %236 : vector<8x128xf32>
    %238 = vector.broadcast %52 : f32 to vector<8x128xf32>
    %239 = arith.mulf %238, %114 : vector<8x128xf32>
    %240 = arith.addf %237, %239 : vector<8x128xf32>
    %241 = vector.broadcast %53 : f32 to vector<8x128xf32>
    %242 = arith.mulf %241, %126 : vector<8x128xf32>
    %243 = arith.addf %240, %242 : vector<8x128xf32>
    %244 = vector.broadcast %54 : f32 to vector<8x128xf32>
    %245 = arith.mulf %244, %138 : vector<8x128xf32>
    %246 = arith.addf %243, %245 : vector<8x128xf32>
    %247 = vector.broadcast %55 : f32 to vector<8x128xf32>
    %248 = arith.mulf %247, %150 : vector<8x128xf32>
    %249 = arith.addf %246, %248 : vector<8x128xf32>
    %250 = vector.broadcast %56 : f32 to vector<8x128xf32>
    %251 = arith.mulf %250, %162 : vector<8x128xf32>
    %252 = arith.addf %249, %251 : vector<8x128xf32>
    %253 = vector.broadcast %57 : f32 to vector<8x128xf32>
    %254 = arith.mulf %253, %174 : vector<8x128xf32>
    %255 = arith.addf %252, %254 : vector<8x128xf32>
    %256 = vector.broadcast %58 : f32 to vector<8x128xf32>
    %257 = arith.mulf %256, %186 : vector<8x128xf32>
    %258 = arith.addf %255, %257 : vector<8x128xf32>
    %259 = vector.broadcast %59 : f32 to vector<8x128xf32>
    %260 = arith.mulf %259, %198 : vector<8x128xf32>
    %261 = arith.addf %258, %260 : vector<8x128xf32>
    %262 = vector.broadcast %71 : f32 to vector<8x128xf32>
    %263 = arith.addf %261, %262 : vector<8x128xf32>
    %c1_21 = arith.constant 1 : index
    %c0_22 = arith.constant 0 : index
    %c0_23 = arith.constant 0 : index
    %264 = vector.load %arg3[%c1_21, %c0_22, %c0_23] : memref<3x8x128xf32, #tpu.memory_space<vmem>>, vector<1x8x128xf32>
    %265 = vector.shape_cast %264 : vector<1x8x128xf32> to vector<8x128xf32>
    %266 = vector.shape_cast %263 : vector<8x128xf32> to vector<1x8x128xf32>
    tpu.vector_store %arg3[%c1_21, %c0_22, %c0_23], %266 {strides = array<i32>} : memref<3x8x128xf32, #tpu.memory_space<vmem>>, vector<1x8x128xf32>,
    %267 = vector.broadcast %60 : f32 to vector<8x128xf32>
    %268 = arith.mulf %267, %90 : vector<8x128xf32>
    %269 = vector.broadcast %61 : f32 to vector<8x128xf32>
    %270 = arith.mulf %269, %102 : vector<8x128xf32>
    %271 = arith.addf %268, %270 : vector<8x128xf32>
    %272 = vector.broadcast %62 : f32 to vector<8x128xf32>
    %273 = arith.mulf %272, %114 : vector<8x128xf32>
    %274 = arith.addf %271, %273 : vector<8x128xf32>
    %275 = vector.broadcast %63 : f32 to vector<8x128xf32>
    %276 = arith.mulf %275, %126 : vector<8x128xf32>
    %277 = arith.addf %274, %276 : vector<8x128xf32>
    %278 = vector.broadcast %64 : f32 to vector<8x128xf32>
    %279 = arith.mulf %278, %138 : vector<8x128xf32>
    %280 = arith.addf %277, %279 : vector<8x128xf32>
    %281 = vector.broadcast %65 : f32 to vector<8x128xf32>
    %282 = arith.mulf %281, %150 : vector<8x128xf32>
    %283 = arith.addf %280, %282 : vector<8x128xf32>
    %284 = vector.broadcast %66 : f32 to vector<8x128xf32>
    %285 = arith.mulf %284, %162 : vector<8x128xf32>
    %286 = arith.addf %283, %285 : vector<8x128xf32>
    %287 = vector.broadcast %67 : f32 to vector<8x128xf32>
    %288 = arith.mulf %287, %174 : vector<8x128xf32>
    %289 = arith.addf %286, %288 : vector<8x128xf32>
    %290 = vector.broadcast %68 : f32 to vector<8x128xf32>
    %291 = arith.mulf %290, %186 : vector<8x128xf32>
    %292 = arith.addf %289, %291 : vector<8x128xf32>
    %293 = vector.broadcast %69 : f32 to vector<8x128xf32>
    %294 = arith.mulf %293, %198 : vector<8x128xf32>
    %295 = arith.addf %292, %294 : vector<8x128xf32>
    %296 = vector.broadcast %72 : f32 to vector<8x128xf32>
    %297 = arith.addf %295, %296 : vector<8x128xf32>
    %c2_24 = arith.constant 2 : index
    %c0_25 = arith.constant 0 : index
    %c0_26 = arith.constant 0 : index
    %298 = vector.load %arg3[%c2_24, %c0_25, %c0_26] : memref<3x8x128xf32, #tpu.memory_space<vmem>>, vector<1x8x128xf32>
    %299 = vector.shape_cast %298 : vector<1x8x128xf32> to vector<8x128xf32>
    %300 = vector.shape_cast %297 : vector<8x128xf32> to vector<1x8x128xf32>
    tpu.vector_store %arg3[%c2_24, %c0_25, %c0_26], %300 {strides = array<i32>} : memref<3x8x128xf32, #tpu.memory_space<vmem>>, vector<1x8x128xf32>,
    return
  }
  func.func @transform_0(%arg0: i32) -> i32 {
    %c0_i32 = arith.constant 0 : i32
    %c0_i32_0 = arith.constant 0 : i32
    return %c0_i32 : i32
  }
  func.func @transform_1(%arg0: i32) -> (i32, i32, i32) {
    %c0_i32 = arith.constant 0 : i32
    %c0_i32_0 = arith.constant 0 : i32
    %c0_i32_1 = arith.constant 0 : i32
    return %c0_i32, %arg0, %c0_i32_0 : i32, i32, i32
  }
  func.func @transform_2(%arg0: i32) -> (i32, i32, i32) {
    %c0_i32 = arith.constant 0 : i32
    %c0_i32_0 = arith.constant 0 : i32
    %c0_i32_1 = arith.constant 0 : i32
    return %c0_i32, %arg0, %c0_i32_0 : i32, i32, i32
  }
}

</mosaic_0001>

<bundles_post_ra>
// kernel: tpu_custom_call.1
= control target key start
LH: loop header
LB: loop body
LE: loop exit
PB: predicated region body
PF: predicated region fallthrough
CT: control target
= control target key end

     0   :  { %7 = vsyncpa [#allocation5], 0  ;;  %s788_s0 = inlined_call_operand.hbm [shape: f32[80], index: 0, kind: input, shape index: {}]   ;;  %s789_s1 = inlined_call_operand.hbm [shape: f32[3,8,128], index: 1, kind: input, shape index: {}]   ;;  %s790_s2 = inlined_call_operand.hbm [shape: f32[3,8,128], index: 2, kind: output, shape index: {}]  }
   0x1   :  { %8 = vsyncpa [#allocation3], 0 }
   0x2   :  { %9 = vsyncpa [#allocation4], 0  ;;  %s472_s9 = smov [#allocation2]   ;;  %s473_s12 = smov [#allocation6]  }
   0x3   :  { %17 = dma.hbm_to_smem %s788_s0, 16, %s472_s9, [#allocation5]  }
   0x4   :  { %s23_s13 = sshll.u32 %s473_s12, 4  ;;  %s24_s13 = int_to_ptr.vmem [resolvable:$true] %s23_s13 }
   0x5   :  { %s434_s14 = scalar_lea.vmem %s24_s13, 384  ;;  %p439_p1 = scmp.lt.s32.totalorder %s24_s13, %s24_s13 }
   0x6   :  { %p435_p0 = scmp.ne.s32.totalorder %s24_s13, %s434_s14  ;;  %p440_p2 = scmp.lt.s32.totalorder %s434_s14, %s434_s14 }
   0x8   :  { %p441_p3 = por %p440_p2, %p439_p1 }
   0xa   :  { %p442_p4 = pnand %p441_p3, %p435_p0 }
   0xc   :  { %445 = shalt.err (!%p442_p4)
}
   0xd   :  { %s474_s15 = smov 128   ;;  %s475_s16 = smov 8  }
   0xe   :  { %29 = dma.hbm_to_vmem [thread:$0]  %s789_s1, 384, %s24_s13, [#allocation3], %s474_s15, %s474_s15, %s475_s16  }
   0xf   :  { %466 = dma.done.wait [#allocation5], 16  }
  0x10   :  { %467 = vsyncadd [#allocation5], 4294967280 }
  0x11   :  { %468 = dma.done.wait [#allocation3], 384  }
  0x12   :  { %469 = vsyncadd [#allocation3], 4294966912 }
  0x13   :  { %36 = sfence }
  0x14   :  { %s37_s0 = sld [smem:[#allocation2]]  ;;  %v539_v0 = vld [vmem:[#allocation6] sm:$0xff]  ;;  %v543_v2 = vld [vmem:[#allocation6 + $0x8] sm:$0xff]  ;;  %v563_v13 = vld [vmem:[#allocation6 + $0x10] sm:$0xff] }
  0x15   :  { %s501_s19 = sld [smem:[#allocation2 + $0x1]] }
  0x16   :  { %s503_s20 = sld [smem:[#allocation2 + $0x2]] }
  0x17   :  { %s505_s21 = sld [smem:[#allocation2 + $0x3]] }
  0x18   :  { %s507_s22 = sld [smem:[#allocation2 + $0x4]] }
  0x19   :  { %s509_s23 = sld [smem:[#allocation2 + $0x5]] }
  0x1a   :  { %s511_s24 = sld [smem:[#allocation2 + $0x6]]  ;;  %v115_v1 = vstv %s37_s0 }
  0x1b   :  { %s513_s25 = sld [smem:[#allocation2 + $0x7]]  ;;  %v117_v3 = vstv %s501_s19  ;;  %v116_v6 = vmul.f32 %v115_v1, %v539_v0 }
  0x1c   :  { %s515_s1 = sld [smem:[#allocation2 + $0x8]]  ;;  %v118_v9 = vmul.f32 %v117_v3, %v543_v2  ;;  %v120_v10 = vstv %s503_s20 }
  0x1d   :  { %s517_s26 = sld [smem:[#allocation2 + $0x9]]  ;;  %v126_v4 = vstv %s505_s21  ;;  %v121_v24 = vmul.f32 %v120_v10, %v563_v13 }
  0x1e   :  { %s519_s27 = sld [smem:[#allocation2 + $0xa]]  ;;  %v128_v5 = vstv %s507_s22  ;;  %v127_v14 = vmul.f32 %v126_v4, %v539_v0  ;;  %v119_v28 = vadd.f32 %v118_v9, %v116_v6 }
  0x1f   :  { %s521_s28 = sld [smem:[#allocation2 + $0xb]]  ;;  %v129_v15 = vmul.f32 %v128_v5, %v543_v2  ;;  %v131_v18 = vstv %s509_s23 }
  0x20   :  { %s523_s29 = sld [smem:[#allocation2 + $0xc]]  ;;  %v137_v7 = vstv %s511_s24  ;;  %v132_v30 = vmul.f32 %v131_v18, %v563_v13  ;;  %v122_v42 = vadd.f32 %v121_v24, %v119_v28 }
  0x21   :  { %s525_s30 = sld [smem:[#allocation2 + $0xd]]  ;;  %v139_v8 = vstv %s513_s25  ;;  %v138_v19 = vmul.f32 %v137_v7, %v539_v0  ;;  %v130_v29 = vadd.f32 %v129_v15, %v127_v14 }
  0x22   :  { %s527_s3 = sld [smem:[#allocation2 + $0xe]]  ;;  %v140_v20 = vmul.f32 %v139_v8, %v543_v2  ;;  %v142_v21 = vstv %s515_s1 }
  0x23   :  { %s529_s4 = sld [smem:[#allocation2 + $0xf]]  ;;  %v148_v11 = vstv %s517_s26  ;;  %v143_v33 = vmul.f32 %v142_v21, %v563_v13  ;;  %v133_v43 = vadd.f32 %v132_v30, %v130_v29 }
  0x24   :  { %s531_s5 = sld [smem:[#allocation2 + $0x10]]  ;;  %v150_v12 = vstv %s519_s27  ;;  %v149_v22 = vmul.f32 %v148_v11, %v539_v0  ;;  %v141_v32 = vadd.f32 %v140_v20, %v138_v19 }
  0x25   :  { %s533_s6 = sld [smem:[#allocation2 + $0x11]]  ;;  %v151_v23 = vmul.f32 %v150_v12, %v543_v2  ;;  %v153_v25 = vstv %s521_s28 }
  0x26   :  { %s535_s7 = sld [smem:[#allocation2 + $0x12]]  ;;  %v159_v16 = vstv %s523_s29  ;;  %v154_v35 = vmul.f32 %v153_v25, %v563_v13  ;;  %v144_v48 = vadd.f32 %v143_v33, %v141_v32 }
  0x27   :  { %s537_s8 = sld [smem:[#allocation2 + $0x13]]  ;;  %v161_v17 = vstv %s525_s30  ;;  %v160_v26 = vmul.f32 %v159_v16, %v539_v0  ;;  %v152_v34 = vadd.f32 %v151_v23, %v149_v22 }
  0x28   :  { %s541_s9 = sld [smem:[#allocation2 + $0x14]]  ;;  %v162_v27 = vmul.f32 %v161_v17, %v543_v2  ;;  %v164_v31 = vstv %s527_s3 }
  0x29   :  { %s546_s10 = sld [smem:[#allocation2 + $0x15]]  ;;  %v170_v36 = vstv %s529_s4  ;;  %v165_v39 = vmul.f32 %v164_v31, %v563_v13  ;;  %v155_v52 = vadd.f32 %v154_v35, %v152_v34 }
  0x2a   :  { %s550_s11 = sld [smem:[#allocation2 + $0x16]]  ;;  %v172_v37 = vstv %s531_s5  ;;  %v163_v38 = vadd.f32 %v162_v27, %v160_v26  ;;  %v171_v44 = vmul.f32 %v170_v36, %v539_v0 }
  0x2b   :  { %s555_s12 = sld [smem:[#allocation2 + $0x17]]  ;;  %v173_v45 = vmul.f32 %v172_v37, %v543_v2  ;;  %v175_v49 = vstv %s533_s6 }
  0x2c   :  { %s561_s13 = sld [smem:[#allocation2 + $0x18]]  ;;  %v181_v40 = vstv %s535_s7  ;;  %v166_v53 = vadd.f32 %v165_v39, %v163_v38  ;;  %v176_v62 = vmul.f32 %v175_v49, %v563_v13 }
  0x2d   :  { %s569_s14 = sld [smem:[#allocation2 + $0x19]]  ;;  %v183_v41 = vstv %s537_s8  ;;  %v182_v50 = vmul.f32 %v181_v40, %v539_v0  ;;  %v174_v61 = vadd.f32 %v173_v45, %v171_v44 }
  0x2e   :  { %s574_s17 = sld [smem:[#allocation2 + $0x1a]]  ;;  %v184_v51 = vmul.f32 %v183_v41, %v543_v2  ;;  %v186_v54 = vstv %s541_s9 }
  0x2f   :  { %s579_s18 = sld [smem:[#allocation2 + $0x1b]]  ;;  %v192_v46 = vstv %s546_s10  ;;  %v187_v4 = vmul.f32 %v186_v54, %v563_v13  ;;  %v177_v16 = vadd.f32 %v176_v62, %v174_v61 }
  0x30   :  { %s585_s0 = sld [smem:[#allocation2 + $0x1c]]  ;;  %v194_v47 = vstv %s550_s11  ;;  %v193_v57 = vmul.f32 %v192_v46, %v539_v0  ;;  %v185_v3 = vadd.f32 %v184_v51, %v182_v50 }
  0x31   :  { %s589_s19 = sld [smem:[#allocation2 + $0x1d]]  ;;  %v195_v58 = vmul.f32 %v194_v47, %v543_v2  ;;  %v197_v63 = vstv %s555_s12 }
  0x32   :  { %s592_s20 = sld [smem:[#allocation2 + $0x1e]]  ;;  %v203_v55 = vstv %s561_s13  ;;  %v198_v14 = vmul.f32 %v197_v63, %v563_v13  ;;  %v188_v26 = vadd.f32 %v187_v4, %v185_v3 }
  0x33   :  { %s597_s21 = sld [smem:[#allocation2 + $0x1f]]  ;;  %v205_v59 = vstv %s569_s14  ;;  %v204_v5 = vmul.f32 %v203_v55, %v539_v0  ;;  %v196_v12 = vadd.f32 %v195_v58, %v193_v57 }
  0x34   :  { %s602_s22 = sld [smem:[#allocation2 + $0x20]]  ;;  %v206_v8 = vmul.f32 %v205_v59, %v543_v2  ;;  %v208_v9 = vstv %s574_s17 }
  0x35   :  { %s604_s23 = sld [smem:[#allocation2 + $0x21]]  ;;  %v209_v18 = vmul.f32 %v208_v9, %v563_v13  ;;  %v214_v19 = vstv %s579_s18  ;;  %v199_v27 = vadd.f32 %v198_v14, %v196_v12 }
  0x36   :  { %s610_s24 = sld [smem:[#allocation2 + $0x22]]  ;;  %v216_v20 = vstv %s585_s0  ;;  %v207_v24 = vadd.f32 %v206_v8, %v204_v5  ;;  %v215_v30 = vmul.f32 %v214_v19, %v539_v0 }
  0x37   :  { %s615_s25 = sld [smem:[#allocation2 + $0x23]]  ;;  %v217_v31 = vmul.f32 %v216_v20, %v543_v2  ;;  %v219_v34 = vstv %s589_s19 }
  0x38   :  { %s619_s1 = sld [smem:[#allocation2 + $0x24]]  ;;  %v123_v56 = vstv %s592_s20  ;;  %v210_v37 = vadd.f32 %v209_v18, %v207_v24 }
  0x39   :  { %s625_s26 = sld [smem:[#allocation2 + $0x25]]  ;;  %v134_v60 = vstv %s597_s21  ;;  %v124_v6 = vadd.f32 %v123_v56, %v122_v42  ;;  %v218_v42 = vadd.f32 %v217_v31, %v215_v30 }
  0x3a   :  { %s630_s27 = sld [smem:[#allocation2 + $0x26]]  ;;  %v145_v1 = vstv %s602_s22  ;;  %v135_v10 = vadd.f32 %v134_v60, %v133_v43  ;;  %v220_v43 = vmul.f32 %v219_v34, %v563_v13 }
  0x3b   :  { %s635_s28 = sld [smem:[#allocation2 + $0x27]]  ;;  %v156_v7 = vstv %s604_s23  ;;  %v146_v15 = vadd.f32 %v145_v1, %v144_v48  ;;  %v653_v21 = vmax.f32 %v124_v6, 0.0 }
  0x3c   :  { %s640_s29 = sld [smem:[#allocation2 + $0x28]]  ;;  %v167_v11 = vstv %s610_s24  ;;  %v157_v17 = vadd.f32 %v156_v7, %v155_v52  ;;  %v658_v25 = vmax.f32 %v135_v10, 0.0  ;;  %v221_v55 = vadd.f32 %v220_v43, %v218_v42 }
  0x3d   :  { %s644_s30 = sld [smem:[#allocation2 + $0x29]]  ;;  %v168_v22 = vadd.f32 %v167_v11, %v166_v53  ;;  %v178_v23 = vstv %s615_s25  ;;  %v662_v28 = vmax.f32 %v146_v15, 0.0 }
  0x3e   :  { %s646_s3 = sld [smem:[#allocation2 + $0x2a]]  ;;  %v189_v29 = vstv %s619_s1  ;;  %v669_v32 = vmax.f32 %v157_v17, 0.0  ;;  %v179_v33 = vadd.f32 %v178_v23, %v177_v16 }
  0x3f   :  { %s651_s4 = sld [smem:[#allocation2 + $0x2b]]  ;;  %v675_v36 = vmax.f32 %v168_v22, 0.0  ;;  %v190_v2 = vadd.f32 %v189_v29, %v188_v26  ;;  %v200_v39 = vstv %s625_s26 }
  0x40   :  { %s656_s5 = sld [smem:[#allocation2 + $0x2c]]  ;;  %v689_v46 = vmax.f32 %v179_v33, 0.0  ;;  %v201_v50 = vadd.f32 %v200_v39, %v199_v27  ;;  %v211_v51 = vstv %s630_s27 }
  0x41   :  { %s660_s6 = sld [smem:[#allocation2 + $0x2d]]  ;;  %v697_v53 = vmax.f32 %v190_v2, 0.0  ;;  %v212_v57 = vadd.f32 %v211_v51, %v210_v37  ;;  %v222_v58 = vstv %s635_s28 }
  0x42   :  { %s667_s7 = sld [smem:[#allocation2 + $0x2e]]  ;;  %v225_v35 = vstv %s640_s29  ;;  %v709_v61 = vmax.f32 %v201_v50, 0.0  ;;  %v223_v4 = vadd.f32 %v222_v58, %v221_v55 }
  0x43   :  { %s673_s8 = sld [smem:[#allocation2 + $0x2f]]  ;;  %v226_v38 = vmul.f32 %v225_v35, %v653_v21  ;;  %v227_v0 = vstv %s644_s30  ;;  %v720_v7 = vmax.f32 %v212_v57, 0.0 }
  0x44   :  { %s679_s9 = sld [smem:[#allocation2 + $0x30]]  ;;  %v228_v40 = vmul.f32 %v227_v0, %v658_v25  ;;  %v230_v41 = vstv %s646_s3  ;;  %v738_v24 = vmax.f32 %v223_v4, 0.0 }
  0x45   :  { %s684_s10 = sld [smem:[#allocation2 + $0x31]]  ;;  %v231_v44 = vmul.f32 %v230_v41, %v662_v28  ;;  %v233_v45 = vstv %s651_s4 }
  0x46   :  { %s390_s11 = sld [smem:[#allocation2 + $0x32]]  ;;  %v229_v47 = vadd.f32 %v228_v40, %v226_v38  ;;  %v234_v48 = vmul.f32 %v233_v45, %v669_v32  ;;  %v236_v49 = vstv %s656_s5 }
  0x47   :  { %s391_s12 = sld [smem:[#allocation2 + $0x33]]  ;;  %v239_v52 = vstv %s660_s6  ;;  %v237_v54 = vmul.f32 %v236_v49, %v675_v36  ;;  %s476_s6 = smov [#allocation7]  }
  0x48   :  { %s695_s13 = sld [smem:[#allocation2 + $0x34]]  ;;  %v232_v13 = vadd.f32 %v231_v44, %v229_v47  ;;  %v242_v56 = vstv %s667_s7  ;;  %v240_v60 = vmul.f32 %v239_v52, %v689_v46  ;;  %s328_s7 = sshll.u32 %s476_s6, 4  ;;  %s329_s7 = int_to_ptr.vmem [resolvable:$true] %s328_s7 }
  0x49   :  { %s700_s14 = sld [smem:[#allocation2 + $0x35]]  ;;  %v243_v63 = vmul.f32 %v242_v56, %v697_v53  ;;  %v245_v1 = vstv %s673_s8  ;;  %s446_s8 = scalar_lea.vmem %s329_s7, 384 }
  0x4a   :  { %s703_s17 = sld [smem:[#allocation2 + $0x36]]  ;;  %v235_v59 = vadd.f32 %v234_v48, %v232_v13  ;;  %v246_v11 = vmul.f32 %v245_v1, %v709_v61  ;;  %v248_v12 = vstv %s679_s9  ;;  %p447_p5 = scmp.ne.s32.totalorder %s329_s7, %s446_s8 }
  0x4b   :  { %s707_s18 = sld [smem:[#allocation2 + $0x37]]  ;;  %v249_v27 = vmul.f32 %v248_v12, %v720_v7  ;;  %v251_v30 = vstv %s684_s10  ;;  %p451_p6 = scmp.lt.s32.totalorder %s329_s7, %s329_s7 }
  0x4c   :  { %s711_s0 = sld [smem:[#allocation2 + $0x38]]  ;;  %v238_v62 = vadd.f32 %v237_v54, %v235_v59  ;;  %v257_v3 = vstv %s390_s11  ;;  %v252_v39 = vmul.f32 %v251_v30, %v738_v24  ;;  %p452_p7 = scmp.lt.s32.totalorder %s446_s8, %s446_s8 }
  0x4d   :  { %s715_s19 = sld [smem:[#allocation2 + $0x39]]  ;;  %v258_v5 = vmul.f32 %v257_v3, %v653_v21  ;;  %v259_v6 = vstv %s391_s12 }
  0x4e   :  { %s718_s20 = sld [smem:[#allocation2 + $0x3a]]  ;;  %v241_v8 = vadd.f32 %v240_v60, %v238_v62  ;;  %v260_v9 = vmul.f32 %v259_v6, %v658_v25  ;;  %v262_v10 = vstv %s695_s13  ;;  %p453_p8 = por %p452_p7, %p451_p6 }
  0x4f   :  { %s724_s21 = sld [smem:[#allocation2 + $0x3b]]  ;;  %v263_v14 = vmul.f32 %v262_v10, %v662_v28  ;;  %v265_v15 = vstv %s700_s14 }
  0x50   :  { %s400_s22 = sld [smem:[#allocation2 + $0x3c]]  ;;  %v244_v16 = vadd.f32 %v243_v63, %v241_v8  ;;  %v261_v17 = vadd.f32 %v260_v9, %v258_v5  ;;  %v266_v18 = vmul.f32 %v265_v15, %v669_v32  ;;  %v268_v19 = vstv %s703_s17  ;;  %p454_p9 = pnand %p453_p8, %p447_p5 }
  0x51   :  { %s401_s23 = sld [smem:[#allocation2 + $0x3d]]  ;;  %v271_v20 = vstv %s707_s18  ;;  %v269_v23 = vmul.f32 %v268_v19, %v675_v36 }
  0x52   :  { %s733_s24 = sld [smem:[#allocation2 + $0x3e]]  ;;  %v264_v22 = vadd.f32 %v263_v14, %v261_v17  ;;  %v247_v26 = vadd.f32 %v246_v11, %v244_v16  ;;  %v274_v29 = vstv %s711_s0  ;;  %v272_v33 = vmul.f32 %v271_v20, %v689_v46 }
  0x53   :  { %s736_s25 = sld [smem:[#allocation2 + $0x3f]]  ;;  %v277_v34 = vstv %s715_s19  ;;  %v275_v37 = vmul.f32 %v274_v29, %v697_v53 }
  0x54   :  { %s742_s1 = sld [smem:[#allocation2 + $0x40]]  ;;  %v267_v31 = vadd.f32 %v266_v18, %v264_v22  ;;  %v280_v38 = vstv %s718_s20  ;;  %v250_v2 = vadd.f32 %v249_v27, %v247_v26  ;;  %v278_v43 = vmul.f32 %v277_v34, %v709_v61 }
  0x55   :  { %s746_s26 = sld [smem:[#allocation2 + $0x41]]  ;;  %v281_v47 = vmul.f32 %v280_v38, %v720_v7  ;;  %v283_v48 = vstv %s724_s21 }
  0x56   :  { %s749_s27 = sld [smem:[#allocation2 + $0x42]]  ;;  %v270_v35 = vadd.f32 %v269_v23, %v267_v31  ;;  %v290_v0 = vstv %s400_s22  ;;  %v284_v55 = vmul.f32 %v283_v48, %v738_v24  ;;  %v253_v58 = vadd.f32 %v252_v39, %v250_v2 }
  0x57   :  { %s753_s28 = sld [smem:[#allocation2 + $0x43]]  ;;  %v291_v40 = vmul.f32 %v290_v0, %v653_v21  ;;  %v292_v41 = vstv %s401_s23 }
  0x58   :  { %s757_s29 = sld [smem:[#allocation2 + $0x44]]  ;;  %v273_v42 = vadd.f32 %v272_v33, %v270_v35  ;;  %v293_v44 = vmul.f32 %v292_v41, %v658_v25  ;;  %v295_v45 = vstv %s733_s24 }
  0x59   :  { %s762_s30 = sld [smem:[#allocation2 + $0x45]]  ;;  %v296_v49 = vmul.f32 %v295_v45, %v662_v28  ;;  %v298_v21 = vstv %s736_s25 }
  0x5a   :  { %s410_s3 = sld [smem:[#allocation2 + $0x46]]  ;;  %v276_v50 = vadd.f32 %v275_v37, %v273_v42  ;;  %v294_v51 = vadd.f32 %v293_v44, %v291_v40  ;;  %v299_v52 = vmul.f32 %v298_v21, %v669_v32  ;;  %v301_v13 = vstv %s742_s1 }
  0x5b   :  { %s411_s4 = sld [smem:[#allocation2 + $0x47]]  ;;  %v304_v54 = vstv %s746_s26  ;;  %v302_v57 = vmul.f32 %v301_v13, %v675_v36 }
  0x5c   :  { %v279_v25 = vadd.f32 %v278_v43, %v276_v50  ;;  %v297_v56 = vadd.f32 %v296_v49, %v294_v51  ;;  %v307_v59 = vstv %s749_s27  ;;  %v305_v62 = vmul.f32 %v304_v54, %v689_v46  ;;  %s412_s5 = sld [smem:[#allocation2 + $0x48]] }
  0x5d   :  { %v310_v63 = vstv %s753_s28  ;;  %v308_v4 = vmul.f32 %v307_v59, %v697_v53 }
  0x5e   :  { %v282_v28 = vadd.f32 %v281_v47, %v279_v25  ;;  %v300_v60 = vadd.f32 %v299_v52, %v297_v56  ;;  %v313_v8 = vstv %s757_s29  ;;  %v311_v36 = vmul.f32 %v310_v63, %v709_v61 }
  0x5f   :  { %v316_v11 = vstv %s762_s30  ;;  %v314_v46 = vmul.f32 %v313_v8, %v720_v7 }
  0x60   :  { %v254_v1 = vstv %s410_s3  ;;  %v285_v32 = vadd.f32 %v284_v55, %v282_v28  ;;  %v303_v3 = vadd.f32 %v302_v57, %v300_v60  ;;  %v317_v15 = vmul.f32 %v316_v11, %v738_v24 }
  0x61   :  { %v255_v5 = vadd.f32 %v254_v1, %v253_v58  ;;  %v286_v6 = vstv %s411_s4 }
  0x62   :  { %v287_v9 = vadd.f32 %v286_v6, %v285_v32  ;;  %v306_v10 = vadd.f32 %v305_v62, %v303_v3  ;;  %v319_v17 = vstv %s412_s5 }
  0x63   :  { %256 = vst [vmem:[#allocation7] sm:$0xff] %v255_v5 }
  0x64   :  { %289 = vst [vmem:[#allocation7 + $0x8] sm:$0xff] %v287_v9  ;;  %v309_v12 = vadd.f32 %v308_v4, %v306_v10 }
  0x66   :  { %v312_v14 = vadd.f32 %v311_v36, %v309_v12 }
  0x68   :  { %v315_v16 = vadd.f32 %v314_v46, %v312_v14 }
  0x6a   :  { %v318_v53 = vadd.f32 %v317_v15, %v315_v16 }
  0x6c   :  { %v320_v18 = vadd.f32 %v319_v17, %v318_v53 }
  0x6e   :  { %322 = vst [vmem:[#allocation7 + $0x10] sm:$0xff] %v320_v18 }
  0x6f   :  { %457 = shalt.err (!%p454_p9)
}
  0x70   :  { %334 = dma.vmem_to_hbm [thread:$0]  %s329_s7, 384, %s790_s2, [#allocation4], %s474_s15, %s474_s15, %s475_s16  }
  0x71   :  { %470 = dma.done.wait [#allocation4], 384  }
  0x72   :  { %471 = vsyncadd [#allocation4], 4294966912 }
  0x73   :  { %338 = vsyncpa [#allocation3], 1 }
  0x74   :  { %339 = vsyncpa [#allocation4], 1 }
  0x75   :  { %340 = vsyncpa [#allocation5], 1 }

</bundles_post_ra>
